<compile_context>
chip_gen: v5e
topology: v5e:2x2
jax: 0.10.0
libtpu: 0.0.40
codegen_flags: <defaults>
</compile_context>

<pallas_src>
import math

import jax
import jax.numpy as jnp
from jax.experimental import pallas as pl
from jax.experimental.pallas import tpu as pltpu

BN_EPS = 1e-5


def _downsample_kernel(w_ref, scale_ref, shift_ref, x_ref, o_ref):
    """One grid step = (batch row b, spatial tile p).

    w_ref     : (C_out, C_in)   folded 1x1 conv weight (VMEM-resident)
    scale_ref : (C_out, 1)      gamma / sqrt(var + eps)
    shift_ref : (C_out, 1)      beta - mean * scale
    x_ref     : (1, C_in, Tp)   stride-2 sampled input tile
    o_ref     : (1, C_out, Tp)  output tile
    """
    x = x_ref[0]                                   # (C_in, Tp)
    w = w_ref[...]                                 # (C_out, C_in)
    acc = jnp.dot(w, x,
                  preferred_element_type=jnp.float32,
                  precision=jax.lax.Precision.HIGHEST)   # (C_out, Tp) on MXU
    y = acc * scale_ref[...] + shift_ref[...]      # fused BatchNorm (eval)
    o_ref[0] = y.astype(o_ref.dtype)


def _choose_spatial_tile(p, c_in, c_out, budget_bytes=4 * 1024 * 1024):
    """Largest lane-dense tile whose (double-buffered) block fits the budget."""
    bytes_per_col = 4 * (c_in + c_out) * 2          # in + out, x2 double buffer
    max_tp = max(128, (budget_bytes // bytes_per_col) // 128 * 128)
    if p <= max_tp:
        return p                                    # full axis: always legal
    return min(max_tp, 2048)                        # multiple of 128


def downsample_forward(x, conv_w, bn_gamma, bn_beta, bn_mean, bn_var,
                       eps=BN_EPS):
    """x: (N, C_in, H, W) f32.  conv_w: (C_out, C_in, 1, 1).  BN params: (C_out,)."""
    n, c_in, h, w = x.shape
    c_out = conv_w.shape[0]
    h_out = (h - 1) // 2 + 1
    w_out = (w - 1) // 2 + 1
    p = h_out * w_out

    # Stride-2 spatial sampling (the conv's stride); stays in native NCHW,
    # then a free contiguous reshape to (N, C_in, P).
    xs = x[:, :, ::2, ::2].reshape(n, c_in, p)

    # 1x1 kernel -> plain (C_out, C_in) matrix; fold BN into scale/shift.
    wmat = conv_w.reshape(c_out, c_in)
    inv_std = jax.lax.rsqrt(bn_var + eps)
    scale = (bn_gamma * inv_std).reshape(c_out, 1)
    shift = (bn_beta - bn_mean * bn_gamma * inv_std).reshape(c_out, 1)

    tp = _choose_spatial_tile(p, c_in, c_out)
    grid = (n, pl.cdiv(p, tp))

    out = pl.pallas_call(
        _downsample_kernel,
        out_shape=jax.ShapeDtypeStruct((n, c_out, p), x.dtype),
        grid_spec=pltpu.PrefetchScalarGridSpec(
            num_scalar_prefetch=0,
            grid=grid,
            in_specs=[
                pl.BlockSpec((c_out, c_in), lambda b, t: (0, 0)),   # weight
                pl.BlockSpec((c_out, 1), lambda b, t: (0, 0)),      # BN scale
                pl.BlockSpec((c_out, 1), lambda b, t: (0, 0)),      # BN shift
                pl.BlockSpec((1, c_in, tp), lambda b, t: (b, 0, t)),  # x tile
            ],
            out_specs=pl.BlockSpec((1, c_out, tp), lambda b, t: (b, 0, t)),
        ),
        compiler_params=pltpu.CompilerParams(
            dimension_semantics=("parallel", "parallel")),
    )(wmat, scale, shift, xs)

    return out.reshape(n, c_out, h_out, w_out)


def _reference(x, conv_w, bn_gamma, bn_beta, bn_mean, bn_var, eps=BN_EPS):
    """Pure-JAX reference mirroring the PyTorch eval-mode forward."""
    c_out, c_in = conv_w.shape[0], conv_w.shape[1]
    xs = x[:, :, ::2, ::2]
    y = jnp.einsum("oi,nihw->nohw", conv_w.reshape(c_out, c_in), xs,
                   precision=jax.lax.Precision.HIGHEST)
    inv_std = jax.lax.rsqrt(bn_var + eps)
    return ((y - bn_mean[None, :, None, None]) *
            (bn_gamma * inv_std)[None, :, None, None] +
            bn_beta[None, :, None, None])


if __name__ == "__main__":
    key = jax.random.PRNGKey(0)
    kx, kw, kg, kb, km, kv = jax.random.split(key, 6)

    N, C_IN, H, W = 2, 4, 16, 16
    C_OUT = 8

    x = jax.random.normal(kx, (N, C_IN, H, W), dtype=jnp.float32)
    conv_w = jax.random.normal(kw, (C_OUT, C_IN, 1, 1), dtype=jnp.float32) \
        * (1.0 / math.sqrt(C_IN))

    # A fresh nn.BatchNorm2d would have gamma=1, beta=0, mean=0, var=1;
    # use non-trivial values so the fused scale/shift path is exercised.
    bn_gamma = 1.0 + 0.1 * jax.random.normal(kg, (C_OUT,), dtype=jnp.float32)
    bn_beta = 0.1 * jax.random.normal(kb, (C_OUT,), dtype=jnp.float32)
    bn_mean = 0.1 * jax.random.normal(km, (C_OUT,), dtype=jnp.float32)
    bn_var = jax.random.uniform(kv, (C_OUT,), dtype=jnp.float32,
                                minval=0.5, maxval=1.5)

    out = downsample_forward(x, conv_w, bn_gamma, bn_beta, bn_mean, bn_var)
    jax.block_until_ready(out)

    ref = _reference(x, conv_w, bn_gamma, bn_beta, bn_mean, bn_var)
    assert out.shape == (N, C_OUT, H // 2, W // 2)
    assert jnp.allclose(out, ref, atol=1e-4, rtol=1e-4), "mismatch vs reference"

    print("KERNEL_OK")
</pallas_src>

<mosaic_0001>
module attributes {stable_mosaic.version = 11 : i64} {
  func.func @_downsample_kernel(%arg0: i32, %arg1: i32, %arg2: memref<8x4xf32, #tpu.memory_space<vmem>>, %arg3: memref<8x1xf32, #tpu.memory_space<vmem>>, %arg4: memref<8x1xf32, #tpu.memory_space<vmem>>, %arg5: memref<1x4x64xf32, #tpu.memory_space<vmem>>, %arg6: memref<1x8x64xf32, #tpu.memory_space<vmem>>) attributes {dimension_semantics = [#tpu.dimension_semantics<parallel>, #tpu.dimension_semantics<parallel>], iteration_bounds = array<i64: 2, 1>, scalar_prefetch = 0 : i64, scratch_operands = 0 : i64, tpu.core_type = #tpu.core_type<tc>, window_params = [{pipeline_mode = #tpu.pipeline_mode<synchronous>, transform_indices = @transform_0, window_bounds = array<i64: 8, 4>}, {pipeline_mode = #tpu.pipeline_mode<synchronous>, transform_indices = @transform_1, window_bounds = array<i64: 8, 1>}, {pipeline_mode = #tpu.pipeline_mode<synchronous>, transform_indices = @transform_2, window_bounds = array<i64: 8, 1>}, {transform_indices = @transform_3, window_bounds = array<i64: 1, 4, 64>}, {transform_indices = @transform_4, window_bounds = array<i64: 1, 8, 64>}]} {
    %c0 = arith.constant 0 : index
    %c0_0 = arith.constant 0 : index
    %c0_1 = arith.constant 0 : index
    %0 = vector.load %arg5[%c0, %c0_0, %c0_1] : memref<1x4x64xf32, #tpu.memory_space<vmem>>, vector<1x4x64xf32>
    %1 = vector.shape_cast %0 : vector<1x4x64xf32> to vector<4x64xf32>
    %c0_2 = arith.constant 0 : index
    %c0_3 = arith.constant 0 : index
    %2 = vector.load %arg2[%c0_2, %c0_3] : memref<8x4xf32, #tpu.memory_space<vmem>>, vector<8x4xf32>
    %cst = arith.constant dense<0.000000e+00> : vector<8x64xf32>
    %3 = tpu.matmul %2, %1, %cst {dimension_numbers = #tpu.dot_dimension_numbers<[1], [0], [0], [1], [0, 0, 1, 1], [], []>, precision = #tpu.contract_precision<fp32>} : vector<8x4xf32>, vector<4x64xf32>, vector<8x64xf32> -> vector<8x64xf32>
    %c0_4 = arith.constant 0 : index
    %c0_5 = arith.constant 0 : index
    %4 = vector.load %arg3[%c0_4, %c0_5] : memref<8x1xf32, #tpu.memory_space<vmem>>, vector<8x1xf32>
    %5 = vector.broadcast %4 : vector<8x1xf32> to vector<8x64xf32>
    %6 = arith.mulf %3, %5 : vector<8x64xf32>
    %c0_6 = arith.constant 0 : index
    %c0_7 = arith.constant 0 : index
    %7 = vector.load %arg4[%c0_6, %c0_7] : memref<8x1xf32, #tpu.memory_space<vmem>>, vector<8x1xf32>
    %8 = vector.broadcast %7 : vector<8x1xf32> to vector<8x64xf32>
    %9 = arith.addf %6, %8 : vector<8x64xf32>
    %c0_8 = arith.constant 0 : index
    %c0_9 = arith.constant 0 : index
    %c0_10 = arith.constant 0 : index
    %10 = vector.load %arg6[%c0_8, %c0_9, %c0_10] : memref<1x8x64xf32, #tpu.memory_space<vmem>>, vector<1x8x64xf32>
    %11 = vector.shape_cast %10 : vector<1x8x64xf32> to vector<8x64xf32>
    %12 = vector.shape_cast %9 : vector<8x64xf32> to vector<1x8x64xf32>
    tpu.vector_store %arg6[%c0_8, %c0_9, %c0_10], %12 {strides = array<i32>} : memref<1x8x64xf32, #tpu.memory_space<vmem>>, vector<1x8x64xf32>,
    return
  }
  func.func @transform_0(%arg0: i32, %arg1: i32) -> (i32, i32) {
    %c0_i32 = arith.constant 0 : i32
    %c0_i32_0 = arith.constant 0 : i32
    %c0_i32_1 = arith.constant 0 : i32
    return %c0_i32, %c0_i32_0 : i32, i32
  }
  func.func @transform_1(%arg0: i32, %arg1: i32) -> (i32, i32) {
    %c0_i32 = arith.constant 0 : i32
    %c0_i32_0 = arith.constant 0 : i32
    %c0_i32_1 = arith.constant 0 : i32
    return %c0_i32, %c0_i32_0 : i32, i32
  }
  func.func @transform_2(%arg0: i32, %arg1: i32) -> (i32, i32) {
    %c0_i32 = arith.constant 0 : i32
    %c0_i32_0 = arith.constant 0 : i32
    %c0_i32_1 = arith.constant 0 : i32
    return %c0_i32, %c0_i32_0 : i32, i32
  }
  func.func @transform_3(%arg0: i32, %arg1: i32) -> (i32, i32, i32) {
    %c0_i32 = arith.constant 0 : i32
    %c0_i32_0 = arith.constant 0 : i32
    return %arg0, %c0_i32, %arg1 : i32, i32, i32
  }
  func.func @transform_4(%arg0: i32, %arg1: i32) -> (i32, i32, i32) {
    %c0_i32 = arith.constant 0 : i32
    %c0_i32_0 = arith.constant 0 : i32
    return %arg0, %c0_i32, %arg1 : i32, i32, i32
  }
}

</mosaic_0001>

<bundles_post_ra>
// kernel: tpu_custom_call.1
= control target key start
LH: loop header
LB: loop body
LE: loop exit
PB: predicated region body
PF: predicated region fallthrough
CT: control target
= control target key end

     0   :  { %9 = vsyncpa [#allocation3], 0  ;;  %s758_s0 = inlined_call_operand.vmem [shape: f32[8,4], index: 0, kind: input, shape index: {}]   ;;  %s759_s1 = inlined_call_operand.vmem [shape: f32[8,1], index: 1, kind: input, shape index: {}]   ;;  %s760_s2 = inlined_call_operand.vmem [shape: f32[8,1], index: 2, kind: input, shape index: {}]   ;;  %s761_s3 = inlined_call_operand.vmem [shape: f32[2,4,64], index: 3, kind: input, shape index: {}]   ;;  %s762_s4 = inlined_call_operand.hbm [shape: f32[2,8,64], index: 4, kind: output, shape index: {}]  }
   0x1   :  { %11 = vsyncpa [#allocation3 + $0x1], 0  ;;  %s652_s15 = smov 0   ;;  %s654_s16 = smov 0  }
   0x2   :  { %s656_s17 = smov 0   ;;  %s658_s18 = smov 0  }
   0x3   :  { %s660_s19 = smov 0   ;;  %s662_s20 = smov 0  }
   0x4 LB: > { %s478_s21 = sadd.s32 4294967295, %s624_s20   ;;  %s479_s22 = sadd.s32 4294967294, %s624_s20   ;;  %s624_s20 = sphi %s662_s20, %s17_s20   ;;  %s620_s19 = sphi %s660_s19, %s769_s19   ;;  %s616_s18 = sphi %s658_s18, %s768_s18   ;;  %s612_s17 = sphi %s656_s17, %s767_s17   ;;  %s608_s16 = sphi %s654_s16, %s766_s16   ;;  %s604_s15 = sphi %s652_s15, %s765_s15  }
   0x5   : > { %s29_s23 = sadd.s32 1, %s620_s19  ;;  %s129_s24 = sadd.s32 1, %s612_s17 }
   0x6   : > { %p31_p0 = scmp.ge.s32.totalorder %s29_s23, 2  ;;  %p139_p1 = scmp.ne.s32.totalorder %s612_s17, %s608_s16 }
   0x7   : > { %p140_p2 = scmp.eq.s32.totalorder %s478_s21, 1  ;;  %p145_p3 = scmp.ne.s32.totalorder %s608_s16, %s604_s15 }
   0x8   : > { %s771_s23 = smov (%p31_p0, %s29_s23), 0  ;;  %p146_p5 = scmp.eq.s32.totalorder %s479_s22, 1 }
   0x9   : > { %p692_p4 = por %p140_p2, %p139_p1  ;;  %s124_s26 = ssub.s32 %s620_s19, %s771_s23 }
   0xa   : > { %p482_p6 = scmp.ge.s32.totalorder %s624_s20, 1  ;;  %p127_p7 = scmp.eq.s32.totalorder %s124_s26, 0 }
   0xb   : > { %p699_p8 = por %p146_p5, %p145_p3  ;;  %p183_p9 = scmp.lt.s32.totalorder %s624_s20, 3 }
   0xc   : > { %s705_s28 = scalar_select %p127_p7, %s612_s17, %s129_s24  }
   0xd   : > { %p184_p10 = pnand %p482_p6, %p183_p9 }
   0xe   : > { %p211_p11 = scmp.lt.s32.totalorder (!%p184_p10), %s616_s18, 1  ;;  %s208_s14 = sand.u32 (!%p184_p10), 1, %s608_s16  }
   0xf   : > { %187 = sbr.rel (%p184_p10) target bundleno = 180 (0xb4), region = 36  ;;  %s483_s21 = sshll.u32 (!%p184_p10), %s208_s14, 3 }
  0x10   : > { %s486_s22 = sshll.u32 (!%p184_p10), %s616_s18, 3  ;;  %s210_s30 = scalar_lea.vmem (!%p184_p10), [#allocation2], %s483_s21 }
  0x11   : > { %s402_s29 = scalar_lea.hbm (!%p184_p10), %s762_s4, %s486_s22  ;;  %s404_s5 = sshll.u32 (!%p184_p10), %s210_s30, 4  ;;  %s405_s5 = int_to_ptr.vmem [resolvable:$true] %s404_s5 }
  0x12   : > { %s406_s6 = sshll.u32 (!%p184_p10), %s402_s29, 4  ;;  %s407_s6 = int_to_ptr.hbm [resolvable:$true] %s406_s6 }
  0x14   : > { %v219_v0 = vld [vmem:[%s758_s0] sm:$0xff]  ;;  %vm220_vm0 = vcmask 31744   ;;  %v626_v3 = vmov 0   ;;  %s212_s7 = scalar_select %p211_p11, %s616_s18, 1  ;;  %vm224_vm1 = vcmask 1043456   ;;  %vm388_vm2 = vcmask 523264  }
  0x15   : > { %v374_v1 = vld [vmem:[%s759_s1] sm:$0xff]  ;;  %v222_v2 = vsel %vm220_vm0, %v219_v0, 0  ;;  %545 = vset.pattern.permute.xlu0 %v626_v3  ;;  %s391_s18 = scalar_lea.sflag [#allocation3], %s208_s14 }
  0x16   : > { %v245_v4 = vand.u32 4294901760, %v222_v2  ;;  %377 = vperm.xlu0 %545, %v374_v1   ;;  %s484_s8 = sshll.u32 %s212_s7, 2  ;;  %v381_v11 = vld [vmem:[%s760_s2] sm:$0xff]  ;;  %s560_s7 = sshra.s32 %s407_s6, 4  ;;  %s561_s7 = int_to_ptr.hbm [resolvable:$true] %s560_s7 }
  0x17   : > { %s217_s11 = scalar_lea.vmem %s761_s3, %s484_s8  ;;  %s562_s8 = scalar_lea.hbm %s561_s7, 8 }
  0x18   : > { %v246_v5 = vsub.f32 %v222_v2, %v245_v4  ;;  %v218_v6 = vld [vmem:[%s217_s11] sm:$0xf]  ;;  %p563_p12 = scmp.ne.s32.totalorder %s561_s7, %s562_s8  ;;  %s566_s11 = scalar_lea.hbm %s762_s4, 16 }
  0x19   : > { %v226_v8 = vsel %vm224_vm1, %v218_v6, 0  ;;  %p567_p1 = scmp.lt.s32.totalorder %s561_s7, %s762_s4  ;;  %p568_p2 = scmp.lt.s32.totalorder %s566_s11, %s562_s8 }
  0x1a   : > { %v247_v7 = vand.u32 4294901760, %v246_v5  ;;  %v243_v9 = vand.u32 4294901760, %v226_v8  ;;  %p564_p13 = pnand %p563_p12, %p692_p4 }
  0x1b   : > { %p569_p3 = por %p568_p2, %p567_p1 }
  0x1c   : > { %v248_v10 = vsub.f32 %v246_v5, %v247_v7  ;;  %v270_v12 = vsub.f32 %v226_v8, %v243_v9  ;;  %244 = vmatpush.msra.mxu0 %v243_v9  ;;  %320 = vmatpush.msra.mxu3 %v243_v9  ;;  %p565_p0 = pneg %p564_p13 }
  0x1d   : > { %324 = vmatmul.f32.vlgmr.msra.gmra.mxu3 %v247_v7 }
  0x1e   : > { %v249_v13 = vand.u32 4294901760, %v248_v10  ;;  %384 = vperm.xlu0 %545, %v381_v11   ;;  %297 = vmatpush.msra.mxu2 %v270_v12  ;;  %v271_v14 = vand.u32 4294901760, %v270_v12  ;;  %p570_p5 = pnand %p569_p3, %p565_p0 }
  0x1f   : > { %300 = vmatmul.f32.vlgmr.msra.gmra.mxu2 %v246_v5 }
  0x20   : > { %250 = vmatmul.f32.vlgmr.msra.gmra.mxu0 %v249_v13  ;;  %v272_v15 = vsub.f32 %v270_v12, %v271_v14 }
  0x21   : > { %346 = vmatpush.msrb.mxu0 %v271_v14 }
  0x22   : > { %v273_v16 = vand.u32 4294901760, %v272_v15 }
  0x24   : > { %274 = vmatpush.msra.mxu1 %v273_v16 }
  0x25   : > { %276 = vmatmul.f32.vlgmr.msra.gmra.mxu1 %v245_v4 }
  0x26   : > { %368 = vmatpush.msrb.mxu1 %v243_v9 }
  0x28   : > { %348 = vmatmul.f32.vlgmr.msrb.gmra.mxu0 %v245_v4 }
  0x2d   : > { %370 = vmatmul.f32.vlgmr.msrb.gmra.mxu1 %v245_v4 }
  0x88   : > { %v378_v21 = vpop.permute.xlu0 %377 }
  0x90   : > { %v385_v30 = vpop.permute.xlu0 %384 }
  0x9d   : > { %v251_v17 = vpop.f32.mrf.mxu0 }
  0xa0   : > { %v325_v22 = vpop.f32.mrf.mxu3 }
  0xa2   : > { %v277_v18 = vpop.f32.mrf.mxu1  ;;  %v301_v19 = vpop.f32.mrf.mxu2 }
  0xa3   : > { %v278_v20 = vadd.f32 %v277_v18, %v251_v17 }
  0xa5   : > { %v302_v23 = vadd.f32 %v301_v19, %v278_v20  ;;  %v349_v24 = vpop.f32.mrf.mxu0 }
  0xa7   : > { %v326_v25 = vadd.f32 %v325_v22, %v302_v23 }
  0xa9   : > { %v350_v26 = vadd.f32 %v349_v24, %v326_v25 }
  0xaa   : > { %v371_v27 = vpop.f32.mrf.mxu1 }
  0xab   : > { %v372_v28 = vadd.f32 %v371_v27, %v350_v26 }
  0xad   : > { %v380_v29 = vmul.f32 %v378_v21, %v372_v28 }
  0xaf   : > { %v387_v31 = vadd.f32 %v385_v30, %v380_v29 }
  0xb1   : > { %389 = vst.msk [vmem:[%s210_s30] sm:$0xff] %vm388_vm2, %v387_v31 }
  0xb2   : > { %573 = shalt.err (!%p570_p5)
}
  0xb3   : > { %489 = dma.vmem_to_hbm [thread:$0]  (%p692_p4), %s405_s5, 128, %s407_s6, %s391_s18  }
  0xb4 PF: > { %p495_p6 = scmp.ge.s32.totalorder %s624_s20, 2  ;;  %s418_s14 = sand.u32 1, %s604_s15  }
  0xb5   : > { %s419_s21 = scalar_lea.sflag [#allocation3], %s418_s14 }
  0xb6   : > { %p492_p7 = pnand %p495_p6, %p699_p8 }
  0xb8   : > { %p493_p9 = pneg %p492_p7 }
  0xba   : > { %599 = dma.done.wait (%p493_p9), %s419_s21, 128  }
  0xbb   : > { %601 = vsyncadd (%p493_p9), %s419_s21, 4294967168  ;;  %s17_s20 = sadd.s32 1, %s624_s20   ;;  %s765_s15 = smov %s608_s16 }
  0xbc   : > { %p14_p10 = scmp.ge.s32.totalorder %s17_s20, 4   ;;  %s766_s16 = smov %s612_s17 }
  0xbd   : > { %s767_s17 = smov %s705_s28  ;;  %s768_s18 = smov %s620_s19 }
  0xbe   : > { %s769_s19 = smov %s771_s23  ;;  %16 = sbr.rel (!%p14_p10) target bundleno = 4 (0x4), region = 71 }
  0xc3   :  { %425 = vsyncpa [#allocation3], 1 }
  0xc4   :  { %427 = vsyncpa [#allocation3 + $0x1], 1 }

</bundles_post_ra>
